<compile_context>
chip_gen: v5e
topology: v5e:2x2
jax: 0.10.0
libtpu: 0.0.40
codegen_flags: <defaults>
</compile_context>

<pallas_src>
import functools

import numpy as np
import jax
import jax.numpy as jnp
from jax.experimental import pallas as pl
from jax.experimental.pallas import tpu as pltpu


def _round_up(v, m):
    return (v + m - 1) // m * m


def _pick_tile_h(H, Wp2, Cp, itemsize=4, budget=2 << 20):
    """Largest divisor of H whose halo'd f32 input slab stays under `budget` bytes."""
    best = 1
    for d in range(1, H + 1):
        if H % d == 0 and Cp * (d + 4) * Wp2 * itemsize <= budget:
            best = d
    return best


def _basic_block_kernel(x_ref, mask_ref, w1_ref, b1_ref, w2_ref, b2_ref, out_ref, *, Wp2):
    """One (batch, row-tile) grid step.

    x_ref    : (1, 1, Cp, Lpad)  channels-first f32 input tile with a 2-pixel halo, spatially
                                 flattened with row stride Wp2, lane-padded (zeros) to Lpad.
    mask_ref : (1, 1, Lpad)      0/1 mask that zeroes conv2's zero-padding ring / halo rows.
    w1_ref   : (Cp, 9*Cp)        conv1 weights; column index = (kh*3 + kw)*Cp + cin.
    b1_ref   : (Cp, 1)
    w2_ref   : (Cp, 9*Cp)        conv2 weights (same column ordering, cin := conv1 output channel).
    b2_ref   : (Cp, 1)
    out_ref  : (1, 1, Cp, Lout)  lane-dense output tile (row stride Wp2; tail columns are garbage
                                 and are stripped by the wrapper).
    """
    Lpad = x_ref.shape[-1]
    Lout = out_ref.shape[-1]
    mxu_dtype = w1_ref.dtype
    offs = [kh * Wp2 + kw for kh in range(3) for kw in range(3)]

    def shifted(v, o):
        # shifted(v, o)[c, i] == v[c, i + o]  (for i + o < Lpad; wrap lands only in masked /
        # never-stored tail positions).  Lane-axis rotate runs on the XLU, not the ld/st slots.
        return v if o == 0 else pltpu.roll(v, shift=Lpad - o, axis=1)

    x32 = x_ref[0, 0]                                                    # (Cp, Lpad) f32

    # ---- conv1 + bias + ReLU: one K=9*Cp matmul over the full lane-dense slab ------------------
    p1 = jnp.concatenate([shifted(x32, o) for o in offs], axis=0)        # (9*Cp, Lpad) f32
    e1 = jnp.dot(w1_ref[...], p1.astype(mxu_dtype),
                 preferred_element_type=jnp.float32)                     # (Cp, Lpad) f32
    e1 = jnp.maximum(e1 + b1_ref[...], 0.0)

    # ---- conv2's zero padding: 0/1 ring mask (precomputed, lane-dense), one VPU multiply --------
    e1 = e1 * mask_ref[0]

    # ---- conv2 + bias: one K=9*Cp matmul ---------------------------------------------------------
    p2 = jnp.concatenate([shifted(e1, o) for o in offs], axis=0)         # (9*Cp, Lpad) f32
    o2 = jnp.dot(w2_ref[...], p2.astype(mxu_dtype),
                 preferred_element_type=jnp.float32) + b2_ref[...]

    # ---- identity residual (re-read from the same input slab, exact f32) + final ReLU -----------
    res = shifted(x32, 2 * Wp2 + 2)
    y = jnp.maximum(o2 + res, 0.0)
    out_ref[0, 0] = y[:, :Lout].astype(out_ref.dtype)                    # lane-dense store


def basic_block_forward(x, w1, b1, w2, b2, *, stride=1, pad=1, dilation=1,
                        tile_h=None, mxu_dtype=None):
    """x: (N, H, W, C) NHWC; weights HWIO (3, 3, Cin, Cout). Returns (N, H, W, Cout).

    Implements the BasicBlock configuration with downsample=None (identity residual), which
    requires stride == 1, pad == dilation == 1 and Cin == Cout, exactly as in the PyTorch module.
    Pass mxu_dtype=jnp.bfloat16 on v6e/v7x for higher MXU rate (elementwise math stays f32).
    """
    # TODO(synk): the `downsample` nn.Module branch (arbitrary module) and stride>1 / dilation>1
    # variants are not representable here; only the identity-residual configuration is implemented.
    N, H, W, C = x.shape
    Cout = w1.shape[-1]
    assert stride == 1 and pad == 1 and dilation == 1 and C == Cout, \
        "downsample=None requires an identity-shaped residual"

    if mxu_dtype is None:
        mxu_dtype = x.dtype                      # recommend jnp.bfloat16 on v6e/v7x

    Cp = _round_up(C, 8)                         # sublane-pad channels (f32 sublane multiple)
    Wp2 = W + 4                                  # 2-pixel halo per side: 5x5 fused receptive field

    if tile_h is None:
        tile_h = _pick_tile_h(H, Wp2, Cp)
    assert H % tile_h == 0
    T = H // tile_h
    Ht = tile_h
    L1 = (Ht + 2) * Wp2 + 2                      # flattened conv1 extent (covers conv2's reads)
    L2 = Ht * Wp2                                # flattened per-tile output extent (row stride Wp2)
    Lout = _round_up(L2, 128)                    # lane-dense stored width
    Lpad = _round_up((Ht + 4) * Wp2 + 4, 128)    # lane-dense input tile width
    assert Lout <= Lpad

    # ---- host-side layout plumbing (XLA): channels-first, channel+halo padding, flatten ---------
    xcf = jnp.transpose(x, (0, 3, 1, 2))                                  # (N, C,  H,   W)
    xp = jnp.pad(xcf, ((0, 0), (0, Cp - C), (2, 2), (2, 2)))              # (N, Cp, H+4, Wp2)
    if T == 1:
        tiles = xp.reshape(N, 1, Cp, (H + 4) * Wp2)                       # no halo duplication
    else:
        # TODO(synk): for very tall images the overlapping row tiles duplicate halo rows
        # (~(Ht+4)/Ht extra HBM traffic); an un-duplicated HBM layout + manual make_async_copy
        # double-buffering would remove it.
        tiles = jnp.stack([xp[:, :, t * Ht: t * Ht + Ht + 4, :] for t in range(T)], axis=1)
        tiles = tiles.reshape(N, T, Cp, (Ht + 4) * Wp2)
    tiles = jnp.pad(tiles, ((0, 0), (0, 0), (0, 0), (0, Lpad - (Ht + 4) * Wp2)))

    # lane-dense per-tile 0/1 mask for conv2's zero-padding ring (cols 0 and W+1 of every padded-
    # width row, out-of-image halo rows, and the lane-padding tail).
    # TODO(synk): generate this in-kernel from iota div/mod to drop the input stream entirely.
    q = np.arange(Lpad)
    r, s = q // Wp2, q % Wp2
    mask = np.stack([(q < L1) & (s >= 1) & (s <= W)
                     & (t * Ht - 1 + r >= 0) & (t * Ht - 1 + r < H) for t in range(T)])
    ring_mask = jnp.asarray(mask[:, None, :], dtype=jnp.float32)          # (T, 1, Lpad)

    # weights as (Cp, 9*Cp) (column = (kh*3+kw)*Cp + cin), biases as (Cp, 1); zero-padded channels
    # contribute nothing to either conv or the residual.
    w1p = jnp.pad(w1, ((0, 0), (0, 0), (0, Cp - C), (0, Cp - C)))
    w2p = jnp.pad(w2, ((0, 0), (0, 0), (0, Cp - C), (0, Cp - C)))
    w1f = jnp.transpose(w1p.reshape(9 * Cp, Cp)).astype(mxu_dtype)
    w2f = jnp.transpose(w2p.reshape(9 * Cp, Cp)).astype(mxu_dtype)
    b1c = jnp.pad(b1, (0, Cp - C)).reshape(Cp, 1).astype(jnp.float32)
    b2c = jnp.pad(b2, (0, Cp - C)).reshape(Cp, 1).astype(jnp.float32)

    kernel = functools.partial(_basic_block_kernel, Wp2=Wp2)

    flops = 2 * 2 * 9 * N * H * W * Cp * Cp                               # two 3x3 convs
    bytes_accessed = int(tiles.size * tiles.dtype.itemsize
                         + N * T * Cp * Lout * x.dtype.itemsize
                         + (w1f.size + w2f.size) * jnp.dtype(mxu_dtype).itemsize
                         + (b1c.size + b2c.size) * 4 + ring_mask.size * 4)

    out_tiles = pl.pallas_call(
        kernel,
        out_shape=jax.ShapeDtypeStruct((N, T, Cp, Lout), x.dtype),
        grid_spec=pltpu.PrefetchScalarGridSpec(
            num_scalar_prefetch=0,
            grid=(N, T),
            in_specs=[
                pl.BlockSpec((1, 1, Cp, Lpad), lambda n, t: (n, t, 0, 0)),
                pl.BlockSpec((1, 1, Lpad), lambda n, t: (t, 0, 0)),
                pl.BlockSpec((Cp, 9 * Cp), lambda n, t: (0, 0)),
                pl.BlockSpec((Cp, 1), lambda n, t: (0, 0)),
                pl.BlockSpec((Cp, 9 * Cp), lambda n, t: (0, 0)),
                pl.BlockSpec((Cp, 1), lambda n, t: (0, 0)),
            ],
            out_specs=pl.BlockSpec((1, 1, Cp, Lout), lambda n, t: (n, t, 0, 0)),
        ),
        compiler_params=pltpu.CompilerParams(
            dimension_semantics=("parallel", "parallel")),
        cost_estimate=pl.CostEstimate(flops=flops, transcendentals=0,
                                      bytes_accessed=bytes_accessed),
    )(tiles, ring_mask, w1f, b1c, w2f, b2c)

    # strip padded channels, the lane-padding tail and the 2 garbage columns per row; back to NHWC
    out = out_tiles[:, :, :C, :L2].reshape(N, T, C, Ht, Wp2)[..., :W]
    return jnp.transpose(out, (0, 1, 3, 4, 2)).reshape(N, H, W, C)


def basic_block_reference(x, w1, b1, w2, b2):
    """Plain-JAX reference (NHWC / HWIO), mirrors the PyTorch forward with downsample=None."""
    dn = ("NHWC", "HWIO", "NHWC")
    out = jax.lax.conv_general_dilated(x, w1, (1, 1), [(1, 1), (1, 1)],
                                       dimension_numbers=dn) + b1
    out = jax.nn.relu(out)
    out = jax.lax.conv_general_dilated(out, w2, (1, 1), [(1, 1), (1, 1)],
                                       dimension_numbers=dn) + b2
    return jax.nn.relu(out + x)


if __name__ == "__main__":
    # BasicBlock(inplanes=4, planes=4, stride=1, downsample=None, pad=1, dilation=1)
    N, C, H, W = 2, 4, 16, 16

    key = jax.random.PRNGKey(0)
    kx, k1, kb1, k2, kb2 = jax.random.split(key, 5)

    x = jax.random.normal(kx, (N, H, W, C), dtype=jnp.float32)      # NHWC (= NCHW (2,4,16,16))
    w1 = jax.random.normal(k1, (3, 3, C, C), dtype=jnp.float32) * 0.1
    b1 = jax.random.normal(kb1, (C,), dtype=jnp.float32) * 0.1
    w2 = jax.random.normal(k2, (3, 3, C, C), dtype=jnp.float32) * 0.1
    b2 = jax.random.normal(kb2, (C,), dtype=jnp.float32) * 0.1

    ref = basic_block_reference(x, w1, b1, w2, b2)

    # f32 MXU path: tight check against the XLA reference.
    out = jax.block_until_ready(basic_block_forward(x, w1, b1, w2, b2))
    assert out.shape == (N, H, W, C)
    err = float(jnp.max(jnp.abs(out - ref)))
    assert jnp.allclose(out, ref, atol=1e-3, rtol=1e-3), f"f32 max abs err {err}"

    # bf16 MXU path (recommended default on v6e/v7x): looser check reflecting bf16 input rounding.
    out_bf16 = jax.block_until_ready(
        basic_block_forward(x, w1, b1, w2, b2, mxu_dtype=jnp.bfloat16))
    err_bf16 = float(jnp.max(jnp.abs(out_bf16 - ref)))
    assert jnp.allclose(out_bf16, ref, atol=5e-2, rtol=5e-2), f"bf16 max abs err {err_bf16}"

    print("KERNEL_OK")
</pallas_src>

<mosaic_0001>
module attributes {stable_mosaic.version = 11 : i64} {
  func.func @_basic_block_kernel(%arg0: i32, %arg1: i32, %arg2: memref<1x1x8x512xf32, #tpu.memory_space<vmem>>, %arg3: memref<1x1x512xf32, #tpu.memory_space<vmem>>, %arg4: memref<8x72xf32, #tpu.memory_space<vmem>>, %arg5: memref<8x1xf32, #tpu.memory_space<vmem>>, %arg6: memref<8x72xf32, #tpu.memory_space<vmem>>, %arg7: memref<8x1xf32, #tpu.memory_space<vmem>>, %arg8: memref<1x1x8x384xf32, #tpu.memory_space<vmem>>) attributes {dimension_semantics = [#tpu.dimension_semantics<parallel>, #tpu.dimension_semantics<parallel>], iteration_bounds = array<i64: 2, 1>, scalar_prefetch = 0 : i64, scratch_operands = 0 : i64, tpu.core_type = #tpu.core_type<tc>, window_params = [{transform_indices = @transform_0, window_bounds = array<i64: 1, 1, 8, 512>}, {transform_indices = @transform_1, window_bounds = array<i64: 1, 1, 512>}, {pipeline_mode = #tpu.pipeline_mode<synchronous>, transform_indices = @transform_2, window_bounds = array<i64: 8, 72>}, {pipeline_mode = #tpu.pipeline_mode<synchronous>, transform_indices = @transform_3, window_bounds = array<i64: 8, 1>}, {pipeline_mode = #tpu.pipeline_mode<synchronous>, transform_indices = @transform_4, window_bounds = array<i64: 8, 72>}, {pipeline_mode = #tpu.pipeline_mode<synchronous>, transform_indices = @transform_5, window_bounds = array<i64: 8, 1>}, {transform_indices = @transform_6, window_bounds = array<i64: 1, 1, 8, 384>}]} {
    %c0 = arith.constant 0 : index
    %c0_0 = arith.constant 0 : index
    %c0_1 = arith.constant 0 : index
    %c0_2 = arith.constant 0 : index
    %0 = vector.load %arg2[%c0, %c0_0, %c0_1, %c0_2] : memref<1x1x8x512xf32, #tpu.memory_space<vmem>>, vector<1x1x8x512xf32>
    %1 = vector.shape_cast %0 : vector<1x1x8x512xf32> to vector<8x512xf32>
    %c511_i32 = arith.constant 511 : i32
    %2 = tpu.dynamic_rotate %1 by %c511_i32 dim 1 : vector<8x512xf32>, i32 -> vector<8x512xf32>
    %c510_i32 = arith.constant 510 : i32
    %3 = tpu.dynamic_rotate %1 by %c510_i32 dim 1 : vector<8x512xf32>, i32 -> vector<8x512xf32>
    %c492_i32 = arith.constant 492 : i32
    %4 = tpu.dynamic_rotate %1 by %c492_i32 dim 1 : vector<8x512xf32>, i32 -> vector<8x512xf32>
    %c491_i32 = arith.constant 491 : i32
    %5 = tpu.dynamic_rotate %1 by %c491_i32 dim 1 : vector<8x512xf32>, i32 -> vector<8x512xf32>
    %c490_i32 = arith.constant 490 : i32
    %6 = tpu.dynamic_rotate %1 by %c490_i32 dim 1 : vector<8x512xf32>, i32 -> vector<8x512xf32>
    %c472_i32 = arith.constant 472 : i32
    %7 = tpu.dynamic_rotate %1 by %c472_i32 dim 1 : vector<8x512xf32>, i32 -> vector<8x512xf32>
    %c471_i32 = arith.constant 471 : i32
    %8 = tpu.dynamic_rotate %1 by %c471_i32 dim 1 : vector<8x512xf32>, i32 -> vector<8x512xf32>
    %c470_i32 = arith.constant 470 : i32
    %9 = tpu.dynamic_rotate %1 by %c470_i32 dim 1 : vector<8x512xf32>, i32 -> vector<8x512xf32>
    %10 = tpu.concatenate %1, %2, %3, %4, %5, %6, %7, %8, %9 in 0 : vector<8x512xf32>, vector<8x512xf32>, vector<8x512xf32>, vector<8x512xf32>, vector<8x512xf32>, vector<8x512xf32>, vector<8x512xf32>, vector<8x512xf32>, vector<8x512xf32> -> vector<72x512xf32>
    %c0_3 = arith.constant 0 : index
    %c0_4 = arith.constant 0 : index
    %11 = vector.load %arg4[%c0_3, %c0_4] : memref<8x72xf32, #tpu.memory_space<vmem>>, vector<8x72xf32>
    %cst = arith.constant dense<0.000000e+00> : vector<8x512xf32>
    %12 = tpu.matmul %11, %10, %cst {dimension_numbers = #tpu.dot_dimension_numbers<[1], [0], [0], [1], [0, 0, 1, 1], [], []>} : vector<8x72xf32>, vector<72x512xf32>, vector<8x512xf32> -> vector<8x512xf32>
    %c0_5 = arith.constant 0 : index
    %c0_6 = arith.constant 0 : index
    %13 = vector.load %arg5[%c0_5, %c0_6] : memref<8x1xf32, #tpu.memory_space<vmem>>, vector<8x1xf32>
    %14 = vector.broadcast %13 : vector<8x1xf32> to vector<8x512xf32>
    %15 = arith.addf %12, %14 : vector<8x512xf32>
    %cst_7 = arith.constant 0.000000e+00 : f32
    %16 = vector.broadcast %cst_7 : f32 to vector<8x512xf32>
    %17 = arith.maximumf %15, %16 : vector<8x512xf32>
    %c0_8 = arith.constant 0 : index
    %c0_9 = arith.constant 0 : index
    %c0_10 = arith.constant 0 : index
    %18 = vector.load %arg3[%c0_8, %c0_9, %c0_10] : memref<1x1x512xf32, #tpu.memory_space<vmem>>, vector<1x1x512xf32>
    %19 = vector.shape_cast %18 : vector<1x1x512xf32> to vector<1x512xf32>
    %20 = vector.broadcast %19 : vector<1x512xf32> to vector<8x512xf32>
    %21 = arith.mulf %17, %20 : vector<8x512xf32>
    %c511_i32_11 = arith.constant 511 : i32
    %22 = tpu.dynamic_rotate %21 by %c511_i32_11 dim 1 : vector<8x512xf32>, i32 -> vector<8x512xf32>
    %c510_i32_12 = arith.constant 510 : i32
    %23 = tpu.dynamic_rotate %21 by %c510_i32_12 dim 1 : vector<8x512xf32>, i32 -> vector<8x512xf32>
    %c492_i32_13 = arith.constant 492 : i32
    %24 = tpu.dynamic_rotate %21 by %c492_i32_13 dim 1 : vector<8x512xf32>, i32 -> vector<8x512xf32>
    %c491_i32_14 = arith.constant 491 : i32
    %25 = tpu.dynamic_rotate %21 by %c491_i32_14 dim 1 : vector<8x512xf32>, i32 -> vector<8x512xf32>
    %c490_i32_15 = arith.constant 490 : i32
    %26 = tpu.dynamic_rotate %21 by %c490_i32_15 dim 1 : vector<8x512xf32>, i32 -> vector<8x512xf32>
    %c472_i32_16 = arith.constant 472 : i32
    %27 = tpu.dynamic_rotate %21 by %c472_i32_16 dim 1 : vector<8x512xf32>, i32 -> vector<8x512xf32>
    %c471_i32_17 = arith.constant 471 : i32
    %28 = tpu.dynamic_rotate %21 by %c471_i32_17 dim 1 : vector<8x512xf32>, i32 -> vector<8x512xf32>
    %c470_i32_18 = arith.constant 470 : i32
    %29 = tpu.dynamic_rotate %21 by %c470_i32_18 dim 1 : vector<8x512xf32>, i32 -> vector<8x512xf32>
    %30 = tpu.concatenate %21, %22, %23, %24, %25, %26, %27, %28, %29 in 0 : vector<8x512xf32>, vector<8x512xf32>, vector<8x512xf32>, vector<8x512xf32>, vector<8x512xf32>, vector<8x512xf32>, vector<8x512xf32>, vector<8x512xf32>, vector<8x512xf32> -> vector<72x512xf32>
    %c0_19 = arith.constant 0 : index
    %c0_20 = arith.constant 0 : index
    %31 = vector.load %arg6[%c0_19, %c0_20] : memref<8x72xf32, #tpu.memory_space<vmem>>, vector<8x72xf32>
    %cst_21 = arith.constant dense<0.000000e+00> : vector<8x512xf32>
    %32 = tpu.matmul %31, %30, %cst_21 {dimension_numbers = #tpu.dot_dimension_numbers<[1], [0], [0], [1], [0, 0, 1, 1], [], []>} : vector<8x72xf32>, vector<72x512xf32>, vector<8x512xf32> -> vector<8x512xf32>
    %c0_22 = arith.constant 0 : index
    %c0_23 = arith.constant 0 : index
    %33 = vector.load %arg7[%c0_22, %c0_23] : memref<8x1xf32, #tpu.memory_space<vmem>>, vector<8x1xf32>
    %34 = vector.broadcast %33 : vector<8x1xf32> to vector<8x512xf32>
    %35 = arith.addf %32, %34 : vector<8x512xf32>
    %c470_i32_24 = arith.constant 470 : i32
    %36 = tpu.dynamic_rotate %1 by %c470_i32_24 dim 1 : vector<8x512xf32>, i32 -> vector<8x512xf32>
    %37 = arith.addf %35, %36 : vector<8x512xf32>
    %cst_25 = arith.constant 0.000000e+00 : f32
    %38 = vector.broadcast %cst_25 : f32 to vector<8x512xf32>
    %39 = arith.maximumf %37, %38 : vector<8x512xf32>
    %40 = vector.extract_strided_slice %39 {offsets = [0, 0], sizes = [8, 384], strides = [1, 1]} : vector<8x512xf32> to vector<8x384xf32>
    %c0_26 = arith.constant 0 : index
    %c0_27 = arith.constant 0 : index
    %c0_28 = arith.constant 0 : index
    %c0_29 = arith.constant 0 : index
    %41 = vector.load %arg8[%c0_26, %c0_27, %c0_28, %c0_29] : memref<1x1x8x384xf32, #tpu.memory_space<vmem>>, vector<1x1x8x384xf32>
    %42 = vector.shape_cast %41 : vector<1x1x8x384xf32> to vector<8x384xf32>
    %43 = vector.shape_cast %40 : vector<8x384xf32> to vector<1x1x8x384xf32>
    tpu.vector_store %arg8[%c0_26, %c0_27, %c0_28, %c0_29], %43 {strides = array<i32>} : memref<1x1x8x384xf32, #tpu.memory_space<vmem>>, vector<1x1x8x384xf32>,
    return
  }
  func.func @transform_0(%arg0: i32, %arg1: i32) -> (i32, i32, i32, i32) {
    %c0_i32 = arith.constant 0 : i32
    %c0_i32_0 = arith.constant 0 : i32
    %c0_i32_1 = arith.constant 0 : i32
    return %arg0, %arg1, %c0_i32, %c0_i32_0 : i32, i32, i32, i32
  }
  func.func @transform_1(%arg0: i32, %arg1: i32) -> (i32, i32, i32) {
    %c0_i32 = arith.constant 0 : i32
    %c0_i32_0 = arith.constant 0 : i32
    %c0_i32_1 = arith.constant 0 : i32
    return %arg1, %c0_i32, %c0_i32_0 : i32, i32, i32
  }
  func.func @transform_2(%arg0: i32, %arg1: i32) -> (i32, i32) {
    %c0_i32 = arith.constant 0 : i32
    %c0_i32_0 = arith.constant 0 : i32
    %c0_i32_1 = arith.constant 0 : i32
    return %c0_i32, %c0_i32_0 : i32, i32
  }
  func.func @transform_3(%arg0: i32, %arg1: i32) -> (i32, i32) {
    %c0_i32 = arith.constant 0 : i32
    %c0_i32_0 = arith.constant 0 : i32
    %c0_i32_1 = arith.constant 0 : i32
    return %c0_i32, %c0_i32_0 : i32, i32
  }
  func.func @transform_4(%arg0: i32, %arg1: i32) -> (i32, i32) {
    %c0_i32 = arith.constant 0 : i32
    %c0_i32_0 = arith.constant 0 : i32
    %c0_i32_1 = arith.constant 0 : i32
    return %c0_i32, %c0_i32_0 : i32, i32
  }
  func.func @transform_5(%arg0: i32, %arg1: i32) -> (i32, i32) {
    %c0_i32 = arith.constant 0 : i32
    %c0_i32_0 = arith.constant 0 : i32
    %c0_i32_1 = arith.constant 0 : i32
    return %c0_i32, %c0_i32_0 : i32, i32
  }
  func.func @transform_6(%arg0: i32, %arg1: i32) -> (i32, i32, i32, i32) {
    %c0_i32 = arith.constant 0 : i32
    %c0_i32_0 = arith.constant 0 : i32
    %c0_i32_1 = arith.constant 0 : i32
    return %arg0, %arg1, %c0_i32, %c0_i32_0 : i32, i32, i32, i32
  }
}

</mosaic_0001>

<bundles_post_ra>
// kernel: tpu_custom_call.1
= control target key start
LH: loop header
LB: loop body
LE: loop exit
PB: predicated region body
PF: predicated region fallthrough
CT: control target
= control target key end

     0   :  { %s1701_s0 = inlined_call_operand.hbm [shape: f32[2,1,8,512], index: 0, kind: input, shape index: {}]   ;;  %s1702_s1 = inlined_call_operand.hbm [shape: f32[1,1,512], index: 1, kind: input, shape index: {}]   ;;  %s1703_s2 = inlined_call_operand.vmem [shape: f32[8,72], index: 2, kind: input, shape index: {}]   ;;  %s1704_s3 = inlined_call_operand.vmem [shape: f32[8,1], index: 3, kind: input, shape index: {}]   ;;  %s1705_s4 = inlined_call_operand.vmem [shape: f32[8,72], index: 4, kind: input, shape index: {}]   ;;  %s1706_s5 = inlined_call_operand.vmem [shape: f32[8,1], index: 5, kind: input, shape index: {}]   ;;  %s1707_s6 = inlined_call_operand.hbm [shape: f32[2,1,8,384], index: 6, kind: output, shape index: {}]  }
   0x1   :  { %1709 = sst [smem:[#allocation12_spill]] %s1702_s1 }
   0x2   :  { %11 = vsyncpa [#allocation3], 0 }
   0x3   :  { %13 = vsyncpa [#allocation3 + $0x1], 0 }
   0x4   :  { %14 = vsyncpa [#allocation6], 0 }
   0x5   :  { %15 = vsyncpa [#allocation4], 0 }
   0x6   :  { %17 = vsyncpa [#allocation4 + $0x1], 0  ;;  %s1227_s21 = smov 0   ;;  %s1229_s22 = smov 0  }
   0x7   :  { %s1231_s23 = smov 0   ;;  %s1233_s24 = smov 0  }
   0x8   :  { %s1235_s25 = smov 0   ;;  %s1237_s26 = smov 0  }
   0x9 LB: > { %s811_s27 = sadd.s32 4294967295, %s1180_s26   ;;  %s812_s28 = sadd.s32 4294967294, %s1180_s26   ;;  %s1180_s26 = sphi %s1237_s26, %s23_s26   ;;  %s1176_s25 = sphi %s1235_s25, %s1724_s25   ;;  %s1172_s24 = sphi %s1233_s24, %s1723_s24   ;;  %s1168_s23 = sphi %s1231_s23, %s1722_s23   ;;  %s1164_s22 = sphi %s1229_s22, %s1721_s22   ;;  %s1160_s21 = sphi %s1227_s21, %s1720_s21  }
   0xa   : > { %p57_p0 = scmp.ne.s32.totalorder %s1164_s22, %s1160_s21  ;;  %p1261_p1 = scmp.eq.s32.totalorder %s811_s27, 0 }
   0xb   : > { %p1265_p2 = scmp.eq.s32.totalorder %s811_s27, 1  ;;  %p199_p3 = scmp.eq.s32.totalorder %s812_s28, 1 }
   0xc   : > { %p1271_p4 = por %p1261_p1, %p57_p0  ;;  %p813_p5 = scmp.ge.s32.totalorder %s1180_s26, 1 }
   0xd   : > { %p1276_p6 = por %p199_p3, %p57_p0  ;;  %p206_p7 = scmp.lt.s32.totalorder %s1180_s26, 3 }
   0xe   : > { %s1715_s1 = sld [smem:[#allocation12_spill]]  ;;  %p815_p9 = scmp.ge.s32.totalorder %s1180_s26, 2 }
   0xf   : > { %s1713_s8 = scalar_select %p1276_p6, 1, 0 }
  0x10   : > { %p1284_p8 = pnand %p813_p5, %p206_p7  ;;  %s1182_s13 = smov [#allocation5]  }
  0x11   : > { %1714 = sst [smem:[#allocation11_spill]] %s1713_s8  ;;  %s222_s14 = sshll.u32 %s1182_s13, 4  ;;  %s223_s14 = int_to_ptr.vmem [resolvable:$true] %s222_s14 }
  0x12   : > { %p843_p10 = pneg %p1284_p8  ;;  %s35_s15 = sadd.s32 1, %s1176_s25 }
  0x13   : > { %p37_p12 = scmp.ge.s32.totalorder %s35_s15, 2  ;;  %s44_s16 = sadd.s32 1, %s1168_s23 }
  0x14   : > { %s220_s11 = sshll.u32 %s1715_s1, 4  ;;  %p844_p11 = pnand %p843_p10, %p1261_p1  ;;  %s221_s11 = int_to_ptr.hbm [resolvable:$true] %s220_s11 }
  0x15   : > { %p51_p13 = scmp.ne.s32.totalorder %s1168_s23, %s1164_s22  ;;  %p52_p0 = scmp.eq.s32.totalorder %s1180_s26, 0 }
  0x16   : > { %846 = dma.hbm_to_vmem [thread:$0]  (!%p844_p11), %s221_s11, 64, %s223_s14, [#allocation6]  }
  0x17   : > { %s1726_s15 = smov (%p37_p12, %s35_s15), 0  ;;  %p1300_p3 = por %p52_p0, %p51_p13 }
  0x18   : > { %p1306_p5 = por %p1265_p2, %p51_p13  ;;  %s39_s19 = ssub.s32 %s1176_s25, %s1726_s15 }
  0x19   : > { %p856_p7 = scmp.lt.s32.totalorder %s1180_s26, 2  ;;  %p42_p10 = scmp.eq.s32.totalorder %s39_s19, 0 }
  0x1a   : > { %s245_s20 = sand.u32 1, %s1168_s23   ;;  %s832_s9 = sshll.u32 %s1176_s25, 5 }
  0x1b   : > { %s816_s27 = sshll.u32 %s245_s20, 5  ;;  %s256_s13 = scalar_lea.hbm %s1701_s0, %s832_s9 }
  0x1c   : > { %s1315_s28 = scalar_select %p42_p10, %s1168_s23, %s44_s16  }
  0x1d   : > { %s249_s14 = scalar_lea.vmem [#allocation2], %s816_s27  ;;  %s258_s30 = sshll.u32 %s256_s13, 4  ;;  %s259_s30 = int_to_ptr.hbm [resolvable:$true] %s258_s30 }
  0x1e   : > { %s260_s1 = sshll.u32 %s249_s14, 4  ;;  %p848_p2 = pnand %p856_p7, %p1300_p3  ;;  %s261_s1 = int_to_ptr.vmem [resolvable:$true] %s260_s1 }
  0x1f   : > { %s246_s8 = scalar_lea.sflag [#allocation3], %s245_s20  ;;  %269 = sbr.rel (%p1284_p8) target bundleno = 652 (0x28c), region = 44 }
  0x20   : > { %850 = dma.hbm_to_vmem [thread:$0]  (!%p848_p2), %s259_s30, 512, %s261_s1, %s246_s8  }
  0x21   : > { %s1326_s16 = sand.u32 (!%p1284_p8), 1, %s1164_s22  }
  0x22   : > { %s820_s19 = sshll.u32 (!%p1284_p8), %s1326_s16, 5  ;;  %s272_s9 = scalar_lea.sflag (!%p1284_p8), [#allocation3], %s1326_s16 }
  0x23   : > { %s1330_s27 = scalar_lea.vmem (!%p1284_p8), [#allocation2], %s820_s19 }
  0x24   : > { %1147 = dma.done.wait (%p1271_p4), %s272_s9, 512  }
  0x25   : > { %1149 = vsyncadd (%p1271_p4), %s272_s9, 4294966784 }
  0x26   : > { %1151 = dma.done.wait (%p1261_p1), [#allocation6], 64  }
  0x27   : > { %1153 = vsyncadd (%p1261_p1), [#allocation6], 4294967232  ;;  %v1341_v0 = vld [vmem:[%s1330_s27 + $0x18] sm:$0xff]  ;;  %v1344_v1 = vld [vmem:[%s1330_s27] sm:$0xff]  ;;  %s1183_s1 = smov 87   ;;  %s1184_s8 = smov 86   ;;  %v322_v6 = vlaneseq }
  0x28   : > { %400 = vrot.lane.b32.xlu2 %v1341_v0, %s1183_s1  ;;  %413 = vrot.lane.b32.xlu1 %v1341_v0, %s1184_s8  ;;  %v1353_v2 = vld [vmem:[%s1330_s27 + $0x10] sm:$0xff]  ;;  %s1185_s29 = smov 88   ;;  %s1186_s7 = smov 106   ;;  %v1376_v4 = vld [vmem:[%s1330_s27 + $0x8] sm:$0xff]  ;;  %v1191_v49 = vmov 0   ;;  %vm427_vm8 = vcmask 588800  }
  0x29   : > { %407 = vrot.lane.b32.xlu0 %v1344_v1, %s1184_s8  ;;  %v922_v3 = vpack.i.bf16 %v1353_v2, %v1344_v1  ;;  %s1187_s12 = smov 108   ;;  %s1188_s17 = smov 107   ;;  %v1397_v7 = vand.u32 127, %v322_v6  ;;  %v421_v48 = vld [vmem:[%s1704_s3] sm:$0xff]  ;;  %952 = vset.pattern.permute.xlu1 %v1191_v49 }
  0x2a   : > { %s1189_s20 = smov 126   ;;  %s1190_s10 = smov 127   ;;  %1033 = vset.pattern.permute.xlu0 %v1191_v49  ;;  %v420_v59 = vld [vmem:[%s1703_s2] sm:$0xff] }
  0x2b   : > { %vm415_vm0 = vcmp.lt.s32.totalorder %v1397_v7, 86  ;;  %vm402_vm1 = vcmp.lt.s32.totalorder %v1397_v7, 87  ;;  %vm389_vm2 = vcmp.lt.s32.totalorder %v1397_v7, 88  ;;  %vm376_vm3 = vcmp.lt.s32.totalorder %v1397_v7, 106  ;;  %s697_s11 = scalar_lea.sflag [#allocation4], %s1326_s16  ;;  %s1114_s9 = scalar_lea.hbm %s1707_s6, 48 }
  0x2c   : > { %vm363_vm4 = vcmp.lt.s32.totalorder %v1397_v7, 107  ;;  %vm350_vm5 = vcmp.lt.s32.totalorder %v1397_v7, 108  ;;  %vm337_vm6 = vcmp.lt.s32.totalorder %v1397_v7, 126  ;;  %vm324_vm7 = vcmp.lt.s32.totalorder %v1397_v7, 127 }
  0x30   : > { %923 = vrot.lane.b32.xlu2 %v922_v3, %s1185_s29  ;;  %918 = vrot.lane.b32.xlu1 %v922_v3, %s1183_s1 }
  0x31   : > { %411 = vrot.lane.b32.xlu0 %v1353_v2, %s1184_s8 }
  0x38   : > { %374 = vrot.lane.b32.xlu2 %v1341_v0, %s1186_s7  ;;  %928 = vrot.lane.b32.xlu1 %v922_v3, %s1186_s7 }
  0x39   : > { %387 = vrot.lane.b32.xlu0 %v1341_v0, %s1185_s29 }
  0x40   : > { %938 = vrot.lane.b32.xlu2 %v922_v3, %s1187_s12  ;;  %361 = vrot.lane.b32.xlu1 %v1341_v0, %s1188_s17 }
  0x41   : > { %933 = vrot.lane.b32.xlu0 %v922_v3, %s1188_s17 }
  0x48   : > { %335 = vrot.lane.b32.xlu2 %v1341_v0, %s1189_s20  ;;  %943 = vrot.lane.b32.xlu1 %v922_v3, %s1189_s20 }
  0x49   : > { %348 = vrot.lane.b32.xlu0 %v1341_v0, %s1187_s12 }
  0x50   : > { %320 = vrot.lane.b32.xlu2 %v1341_v0, %s1190_s10  ;;  %948 = vrot.lane.b32.xlu1 %v922_v3, %s1190_s10 }
  0x51   : > { %409 = vrot.lane.b32.xlu0 %v1376_v4, %s1184_s8 }
  0x58   : > { %370 = vrot.lane.b32.xlu2 %v1376_v4, %s1186_s7  ;;  %383 = vrot.lane.b32.xlu1 %v1376_v4, %s1185_s29 }
  0x59   : > { %396 = vrot.lane.b32.xlu0 %v1376_v4, %s1183_s1 }
  0x60   : > { %344 = vrot.lane.b32.xlu1 %v1376_v4, %s1187_s12  ;;  %331 = vrot.lane.b32.xlu2 %v1376_v4, %s1189_s20 }
  0x61   : > { %357 = vrot.lane.b32.xlu0 %v1376_v4, %s1188_s17 }
  0x68   : > { %424 = vperm.xlu1 %952, %v421_v48  }
  0x69   : > { %316 = vrot.lane.b32.xlu0 %v1376_v4, %s1190_s10 }
  0x82   : > { %v401_v5 = vpop.permute.xlu2 %400 }
  0x8a   : > { %v1400_v9 = vpop.permute.xlu2 %923 }
  0x8b   : > { %v926_v20 = vunpack.i.h.bf16 %v1400_v9  ;;  %v925_v21 = vunpack.i.l.bf16 %v1400_v9 }
  0x92   : > { %v375_v17 = vpop.permute.xlu2 %374 }
  0x9a   : > { %v414_v8 = vpop.permute.xlu1 %413  ;;  %v1452_v30 = vpop.permute.xlu2 %938 }
  0x9b   : > { %v1402_v10 = vpop.permute.xlu0 %407  ;;  %v941_v37 = vunpack.i.h.bf16 %v1452_v30  ;;  %v940_v38 = vunpack.i.l.bf16 %v1452_v30 }
  0x9c   : > { %v419_v11 = vsel %vm415_vm0, %v414_v8, %v1402_v10 }
  0x9d   : > { %498 = vmatpush.msra.mxu3 %v419_v11 }
  0xa2   : > { %v1407_v12 = vpop.permute.xlu1 %918  ;;  %v336_v39 = vpop.permute.xlu2 %335 }
  0xa3   : > { %v921_v13 = vunpack.i.h.bf16 %v1407_v12  ;;  %v920_v14 = vunpack.i.l.bf16 %v1407_v12  ;;  %v1412_v15 = vpop.permute.xlu0 %411 }
  0xa4   : > { %v1417_v16 = vsel %vm415_vm0, %v1412_v15, %v414_v8 }
  0xa5   : > { %478 = vmatpush.msra.mxu2 %v1417_v16  ;;  %v403_v18 = vsel %vm402_vm1, %v921_v13, %v401_v5  ;;  %v406_v19 = vsel %vm402_vm1, %v401_v5, %v920_v14 }
  0xa6   : > { %499 = vmatpush.msra.mxu3 %v406_v19 }
  0xa7   : > { %479 = vmatpush.msra.mxu2 %v403_v18 }
  0xaa   : > { %v1431_v22 = vpop.permute.xlu1 %928  ;;  %v321_v51 = vpop.permute.xlu2 %320 }
  0xab   : > { %v931_v23 = vunpack.i.h.bf16 %v1431_v22  ;;  %v930_v24 = vunpack.i.l.bf16 %v1431_v22  ;;  %v388_v25 = vpop.permute.xlu0 %387  ;;  %v515_v22 = vld [vmem:[#allocation5] sm:$0xf] }
  0xac   : > { %v390_v26 = vsel %vm389_vm2, %v926_v20, %v388_v25  ;;  %v393_v27 = vsel %vm389_vm2, %v388_v25, %v925_v21  ;;  %v518_v30 = vperm.slane %v515_v22, 1 }
  0xad   : > { %480 = vmatpush.msra.mxu2 %v390_v26  ;;  %500 = vmatpush.msra.mxu3 %v393_v27  ;;  %v377_v28 = vsel %vm376_vm3, %v931_v23, %v375_v17  ;;  %v380_v29 = vsel %vm376_vm3, %v375_v17, %v930_v24 }
  0xaf   : > { %481 = vmatpush.msra.mxu2 %v377_v28  ;;  %501 = vmatpush.msra.mxu3 %v380_v29  ;;  %v517_v28 = vperm.slane %v515_v22, 0 }
  0xb2   : > { %v362_v31 = vpop.permute.xlu1 %361  ;;  %v371_v3 = vpop.permute.xlu2 %370 }
  0xb3   : > { %v1454_v32 = vpop.permute.xlu0 %933  ;;  %v379_v5 = vsel %vm376_vm3, %v930_v24, %v371_v3  ;;  %v378_v6 = vsel %vm376_vm3, %v371_v3, %v931_v23 }
  0xb4   : > { %v936_v33 = vunpack.i.h.bf16 %v1454_v32  ;;  %v935_v34 = vunpack.i.l.bf16 %v1454_v32 }
  0xb6   : > { %v364_v35 = vsel %vm363_vm4, %v936_v33, %v362_v31  ;;  %v367_v36 = vsel %vm363_vm4, %v362_v31, %v935_v34 }
  0xb7   : > { %482 = vmatpush.msra.mxu2 %v364_v35  ;;  %502 = vmatpush.msra.mxu3 %v367_v36  ;;  %v519_v36 = vperm.slane %v515_v22, 2 }
  0xba   : > { %v1470_v40 = vpop.permute.xlu1 %943  ;;  %v332_v12 = vpop.permute.xlu2 %331 }
  0xbb   : > { %v946_v41 = vunpack.i.h.bf16 %v1470_v40  ;;  %v945_v42 = vunpack.i.l.bf16 %v1470_v40  ;;  %v349_v43 = vpop.permute.xlu0 %348 }
  0xbc   : > { %v351_v44 = vsel %vm350_vm5, %v941_v37, %v349_v43  ;;  %v354_v45 = vsel %vm350_vm5, %v349_v43, %v940_v38 }
  0xbd   : > { %483 = vmatpush.msra.mxu2 %v351_v44  ;;  %503 = vmatpush.msra.mxu3 %v354_v45  ;;  %v338_v46 = vsel %vm337_vm6, %v946_v41, %v336_v39  ;;  %v341_v47 = vsel %vm337_vm6, %v336_v39, %v945_v42  ;;  %v339_v17 = vsel %vm337_vm6, %v332_v12, %v946_v41 }
  0xbf   : > { %484 = vmatpush.msra.mxu2 %v338_v46  ;;  %504 = vmatpush.msra.mxu3 %v341_v47 }
  0xc2   : > { %v949_v50 = vpop.permute.xlu1 %948 }
  0xc3   : > { %v951_v52 = vunpack.i.h.bf16 %v949_v50  ;;  %v950_v53 = vunpack.i.l.bf16 %v949_v50  ;;  %v410_v54 = vpop.permute.xlu0 %409 }
  0xc4   : > { %v1496_v55 = vsel %vm415_vm0, %v1402_v10, %v410_v54  ;;  %v1501_v56 = vsel %vm415_vm0, %v410_v54, %v1412_v15  ;;  %v340_v15 = vsel %vm337_vm6, %v945_v42, %v332_v12 }
  0xc5   : > { %438 = vmatpush.msra.mxu0 %v1496_v55  ;;  %458 = vmatpush.msra.mxu1 %v1501_v56  ;;  %v325_v57 = vsel %vm324_vm7, %v951_v52, %v321_v51  ;;  %v328_v58 = vsel %vm324_vm7, %v321_v51, %v950_v53 }
  0xc6   : > { %485 = vmatpush.msra.mxu2 %v325_v57  ;;  %505 = vmatpush.msra.mxu3 %v328_v58 }
  0xc8   : > { %486 = vmatpush.msra.mxu2 %v1353_v2  ;;  %506 = vmatpush.msra.mxu3 %v1341_v0 }
  0xc9   : > { %824 = vmatmul.msk.f32.vlgmr.msra.gmra.mxu2 %vm427_vm8, %v420_v59  ;;  %825 = vmatmul.msk.f32.vlgmr.msra.gmra.mxu3 %vm427_vm8, %v420_v59 }
  0xca   : > { %v384_v60 = vpop.permute.xlu1 %383 }
  0xcb   : > { %v397_v61 = vpop.permute.xlu0 %396  ;;  %v392_v0 = vsel %vm389_vm2, %v925_v21, %v384_v60  ;;  %v391_v2 = vsel %vm389_vm2, %v384_v60, %v926_v20 }
  0xcc   : > { %v405_v62 = vsel %vm402_vm1, %v920_v14, %v397_v61  ;;  %v404_v63 = vsel %vm402_vm1, %v397_v61, %v921_v13 }
  0xcd   : > { %439 = vmatpush.msra.mxu0 %v405_v62  ;;  %459 = vmatpush.msra.mxu1 %v404_v63 }
  0xcf   : > { %440 = vmatpush.msra.mxu0 %v392_v0  ;;  %460 = vmatpush.msra.mxu1 %v391_v2 }
  0xd1   : > { %441 = vmatpush.msra.mxu0 %v379_v5  ;;  %461 = vmatpush.msra.mxu1 %v378_v6 }
  0xd2   : > { %v345_v8 = vpop.permute.xlu1 %344 }
  0xd3   : > { %v358_v10 = vpop.permute.xlu0 %357  ;;  %v353_v13 = vsel %vm350_vm5, %v940_v38, %v345_v8  ;;  %v352_v14 = vsel %vm350_vm5, %v345_v8, %v941_v37  ;;  %v520_v37 = vperm.slane %v515_v22, 3 }
  0xd4   : > { %v366_v9 = vsel %vm363_vm4, %v935_v34, %v358_v10  ;;  %v365_v11 = vsel %vm363_vm4, %v358_v10, %v936_v33 }
  0xd5   : > { %442 = vmatpush.msra.mxu0 %v366_v9  ;;  %462 = vmatpush.msra.mxu1 %v365_v11  ;;  %v618_v9 = vld [vmem:[%s1706_s5] sm:$0xff] }
  0xd7   : > { %443 = vmatpush.msra.mxu0 %v353_v13  ;;  %463 = vmatpush.msra.mxu1 %v352_v14 }
  0xd9   : > { %444 = vmatpush.msra.mxu0 %v340_v15  ;;  %464 = vmatpush.msra.mxu1 %v339_v17 }
  0xda   : > { %v425_v21 = vpop.permute.xlu1 %424 }
  0xdb   : > { %v317_v18 = vpop.permute.xlu0 %316 }
  0xdc   : > { %v327_v19 = vsel %vm324_vm7, %v950_v53, %v317_v18  ;;  %v326_v20 = vsel %vm324_vm7, %v317_v18, %v951_v52 }
  0xdd   : > { %445 = vmatpush.msra.mxu0 %v327_v19  ;;  %465 = vmatpush.msra.mxu1 %v326_v20 }
  0xdf   : > { %446 = vmatpush.msra.mxu0 %v1344_v1  ;;  %466 = vmatpush.msra.mxu1 %v1376_v4 }
  0xe0   : > { %822 = vmatmul.msk.f32.vlgmr.msra.gmra.mxu0 %vm427_vm8, %v420_v59  ;;  %823 = vmatmul.msk.f32.vlgmr.msra.gmra.mxu1 %vm427_vm8, %v420_v59 }
 0x14c   : > { %v488_v23 = vpop.f32.mrf.mxu2  ;;  %v508_v24 = vpop.f32.mrf.mxu3 }
 0x14d   : > { %v489_v31 = vadd.f32 %v488_v23, %v425_v21  ;;  %v509_v1 = vadd.f32 %v508_v24, %v425_v21 }
 0x14f   : > { %v513_v35 = vmax.f32 %v489_v31, 0.0  ;;  %v514_v38 = vmax.f32 %v509_v1, 0.0 }
 0x151   : > { %v1579_v40 = vmul.f32 %v519_v36, %v513_v35  ;;  %v528_v41 = vmul.f32 %v520_v37, %v514_v38 }
 0x153   : > { %v988_v42 = vpack.i.bf16 %v528_v41, %v1579_v40 }
 0x15d   : > { %v448_v25 = vpop.f32.mrf.mxu0  ;;  %v468_v26 = vpop.f32.mrf.mxu1 }
 0x15e   : > { %v449_v27 = vadd.f32 %v448_v25, %v425_v21  ;;  %v469_v29 = vadd.f32 %v468_v26, %v425_v21 }
 0x160   : > { %v511_v32 = vmax.f32 %v449_v27, 0.0  ;;  %v512_v33 = vmax.f32 %v469_v29, 0.0 }
 0x162   : > { %v1570_v34 = vmul.f32 %v517_v28, %v511_v32  ;;  %v1572_v4 = vmul.f32 %v518_v30, %v512_v33 }
 0x164   : > { %v963_v39 = vpack.i.bf16 %v1572_v4, %v1570_v34 }
 0x166   : > { %964 = vrot.lane.b32.xlu1 %v963_v39, %s1185_s29  ;;  %959 = vrot.lane.b32.xlu2 %v963_v39, %s1183_s1 }
 0x167   : > { %954 = vrot.lane.b32.xlu0 %v963_v39, %s1184_s8 }
 0x16e   : > { %989 = vrot.lane.b32.xlu1 %v988_v42, %s1185_s29  ;;  %974 = vrot.lane.b32.xlu2 %v963_v39, %s1188_s17  ;;  %s834_s29 = smul.u32 24, %s1172_s24 }
 0x16f   : > { %969 = vrot.lane.b32.xlu0 %v963_v39, %s1186_s7 }
 0x176   : > { %999 = vrot.lane.b32.xlu1 %v988_v42, %s1188_s17  ;;  %979 = vrot.lane.b32.xlu2 %v988_v42, %s1184_s8  ;;  %s833_s8 = smul.u32 24, %s1326_s16  ;;  %s710_s17 = scalar_lea.hbm %s1707_s6, %s834_s29 }
 0x177   : > { %984 = vrot.lane.b32.xlu0 %v988_v42, %s1183_s1 }
 0x178   : > { %s309_s24 = scalar_lea.vmem [#allocation7], %s833_s8 }
 0x17e   : > { %1019 = vrot.lane.b32.xlu1 %v988_v42, %s1190_s10  ;;  %994 = vrot.lane.b32.xlu2 %v988_v42, %s1186_s7 }
 0x17f   : > { %1004 = vrot.lane.b32.xlu0 %v988_v42, %s1187_s12 }
 0x186   : > { %1024 = vrot.lane.b32.xlu1 %v963_v39, %s1189_s20  ;;  %1014 = vrot.lane.b32.xlu2 %v988_v42, %s1189_s20  ;;  %s712_s20 = sshll.u32 %s309_s24, 4  ;;  %s713_s20 = int_to_ptr.vmem [resolvable:$true] %s712_s20 }
 0x187   : > { %1009 = vrot.lane.b32.xlu0 %v963_v39, %s1187_s12 }
 0x18e   : > { %1029 = vrot.lane.b32.xlu2 %v963_v39, %s1190_s10  ;;  %s714_s10 = sshll.u32 %s710_s17, 4  ;;  %s715_s10 = int_to_ptr.hbm [resolvable:$true] %s714_s10 }
 0x18f   : > { %621 = vperm.xlu0 %1033, %v618_v9   ;;  %s1108_s13 = sshra.s32 %s715_s10, 4  ;;  %s1109_s13 = int_to_ptr.hbm [resolvable:$true] %s1108_s13 }
 0x190   : > { %s1110_s14 = scalar_lea.hbm %s1109_s13, 24  ;;  %p1115_p11 = scmp.lt.s32.totalorder %s1109_s13, %s1707_s6 }
 0x191   : > { %p1111_p1 = scmp.ne.s32.totalorder %s1109_s13, %s1110_s14  ;;  %p1116_p12 = scmp.lt.s32.totalorder %s1114_s9, %s1110_s14 }
 0x193   : > { %p1112_p4 = pnand %p1111_p1, %p1306_p5  ;;  %p1117_p13 = por %p1116_p12, %p1115_p11 }
 0x195   : > { %p1113_p8 = pneg %p1112_p4 }
 0x197   : > { %p1118_p0 = pnand %p1117_p13, %p1113_p8 }
 0x1c0   : > { %v960_v43 = vpop.permute.xlu2 %959 }
 0x1c1   : > { %v962_v51 = vunpack.i.h.bf16 %v960_v43  ;;  %v961_v52 = vunpack.i.l.bf16 %v960_v43 }
 0x1c3   : > { %v605_v61 = vsel %vm402_vm1, %v961_v52, %v962_v51 }
 0x1c8   : > { %v1595_v44 = vpop.permute.xlu2 %974 }
 0x1c9   : > { %v977_v0 = vunpack.i.h.bf16 %v1595_v44  ;;  %v976_v2 = vunpack.i.l.bf16 %v1595_v44 }
 0x1cb   : > { %v572_v11 = vsel %vm363_vm4, %v976_v2, %v977_v0 }
 0x1d0   : > { %v980_v45 = vpop.permute.xlu2 %979 }
 0x1d1   : > { %v982_v46 = vunpack.i.h.bf16 %v980_v45  ;;  %v981_v47 = vunpack.i.l.bf16 %v980_v45 }
 0x1d3   : > { %v614_v48 = vsel %vm415_vm0, %v981_v47, %v982_v46 }
 0x1d4   : > { %674 = vmatpush.msrb.mxu2 %v614_v48 }
 0x1d8   : > { %v965_v49 = vpop.permute.xlu1 %964  ;;  %v995_v8 = vpop.permute.xlu2 %994 }
 0x1d9   : > { %v955_v50 = vpop.permute.xlu0 %954  ;;  %v967_v57 = vunpack.i.h.bf16 %v965_v49  ;;  %v966_v58 = vunpack.i.l.bf16 %v965_v49  ;;  %v997_v19 = vunpack.i.h.bf16 %v995_v8  ;;  %v996_v20 = vunpack.i.l.bf16 %v995_v8 }
 0x1da   : > { %v957_v53 = vunpack.i.h.bf16 %v955_v50  ;;  %v956_v54 = vunpack.i.l.bf16 %v955_v50 }
 0x1db   : > { %v594_v63 = vsel %vm389_vm2, %v966_v58, %v967_v57  ;;  %v581_v30 = vsel %vm376_vm3, %v996_v20, %v997_v19 }
 0x1dc   : > { %v616_v59 = vsel %vm415_vm0, %v956_v54, %v957_v53  ;;  %v615_v60 = vsel %vm415_vm0, %v957_v53, %v981_v47  ;;  %v617_v47 = vld [vmem:[%s1705_s4] sm:$0xff] }
 0x1dd   : > { %634 = vmatpush.msrb.mxu0 %v616_v59  ;;  %654 = vmatpush.msrb.mxu1 %v615_v60 }
 0x1df   : > { %635 = vmatpush.msrb.mxu0 %v605_v61 }
 0x1e0   : > { %v990_v62 = vpop.permute.xlu1 %989  ;;  %v1015_v23 = vpop.permute.xlu2 %1014 }
 0x1e1   : > { %v970_v3 = vpop.permute.xlu0 %969  ;;  %636 = vmatpush.msrb.mxu0 %v594_v63  ;;  %v992_v14 = vunpack.i.h.bf16 %v990_v62  ;;  %v991_v15 = vunpack.i.l.bf16 %v990_v62  ;;  %v1017_v31 = vunpack.i.h.bf16 %v1015_v23  ;;  %v1016_v32 = vunpack.i.l.bf16 %v1015_v23 }
 0x1e2   : > { %v972_v5 = vunpack.i.h.bf16 %v970_v3  ;;  %v971_v6 = vunpack.i.l.bf16 %v970_v3 }
 0x1e3   : > { %v593_v26 = vsel %vm389_vm2, %v967_v57, %v991_v15  ;;  %v592_v27 = vsel %vm389_vm2, %v991_v15, %v992_v14  ;;  %v548_v42 = vsel %vm337_vm6, %v1016_v32, %v1017_v31 }
 0x1e4   : > { %v583_v10 = vsel %vm376_vm3, %v971_v6, %v972_v5  ;;  %v582_v29 = vsel %vm376_vm3, %v972_v5, %v996_v20 }
 0x1e5   : > { %637 = vmatpush.msrb.mxu0 %v583_v10 }
 0x1e7   : > { %638 = vmatpush.msrb.mxu0 %v572_v11 }
 0x1e8   : > { %v1000_v12 = vpop.permute.xlu1 %999  ;;  %v1030_v45 = vpop.permute.xlu2 %1029 }
 0x1e9   : > { %v985_v13 = vpop.permute.xlu0 %984  ;;  %v1002_v24 = vunpack.i.h.bf16 %v1000_v12  ;;  %v1001_v25 = vunpack.i.l.bf16 %v1000_v12  ;;  %v1032_v52 = vunpack.i.h.bf16 %v1030_v45  ;;  %v1031_v53 = vunpack.i.l.bf16 %v1030_v45 }
 0x1ea   : > { %v987_v17 = vunpack.i.h.bf16 %v985_v13  ;;  %v986_v18 = vunpack.i.l.bf16 %v985_v13 }
 0x1eb   : > { %v571_v36 = vsel %vm363_vm4, %v977_v0, %v1001_v25  ;;  %v570_v37 = vsel %vm363_vm4, %v1001_v25, %v1002_v24  ;;  %v539_v59 = vsel %vm324_vm7, %v1031_v53, %v1032_v52 }
 0x1ec   : > { %v604_v21 = vsel %vm402_vm1, %v962_v51, %v986_v18  ;;  %v603_v22 = vsel %vm402_vm1, %v986_v18, %v987_v17 }
 0x1ed   : > { %655 = vmatpush.msrb.mxu1 %v604_v21  ;;  %675 = vmatpush.msrb.mxu2 %v603_v22 }
 0x1ef   : > { %656 = vmatpush.msrb.mxu1 %v593_v26  ;;  %676 = vmatpush.msrb.mxu2 %v592_v27 }
 0x1f0   : > { %v1020_v28 = vpop.permute.xlu1 %1019 }
 0x1f1   : > { %v1005_v33 = vpop.permute.xlu0 %1004  ;;  %657 = vmatpush.msrb.mxu1 %v582_v29  ;;  %677 = vmatpush.msrb.mxu2 %v581_v30  ;;  %v1022_v38 = vunpack.i.h.bf16 %v1020_v28  ;;  %v1021_v39 = vunpack.i.l.bf16 %v1020_v28 }
 0x1f2   : > { %v1007_v1 = vunpack.i.h.bf16 %v1005_v33  ;;  %v1006_v35 = vunpack.i.l.bf16 %v1005_v33 }
 0x1f3   : > { %658 = vmatpush.msrb.mxu1 %v571_v36  ;;  %678 = vmatpush.msrb.mxu2 %v570_v37  ;;  %v537_v44 = vsel %vm324_vm7, %v1021_v39, %v1022_v38  ;;  %v538_v60 = vsel %vm324_vm7, %v1032_v52, %v1021_v39 }
 0x1f4   : > { %v559_v41 = vsel %vm350_vm5, %v1006_v35, %v1007_v1 }
 0x1f5   : > { %679 = vmatpush.msrb.mxu2 %v559_v41 }
 0x1f7   : > { %680 = vmatpush.msrb.mxu2 %v548_v42 }
 0x1f8   : > { %v1025_v43 = vpop.permute.xlu1 %1024 }
 0x1f9   : > { %v1010_v46 = vpop.permute.xlu0 %1009  ;;  %681 = vmatpush.msrb.mxu2 %v537_v44  ;;  %v1027_v48 = vunpack.i.h.bf16 %v1025_v43  ;;  %v1026_v49 = vunpack.i.l.bf16 %v1025_v43 }
 0x1fa   : > { %v1012_v50 = vunpack.i.h.bf16 %v1010_v46  ;;  %v1011_v51 = vunpack.i.l.bf16 %v1010_v46 }
 0x1fb   : > { %682 = vmatpush.msrb.mxu2 %v1579_v40  ;;  %v550_v58 = vsel %vm337_vm6, %v1026_v49, %v1027_v48  ;;  %v549_v40 = vsel %vm337_vm6, %v1027_v48, %v1016_v32 }
 0x1fc   : > { %828 = vmatmul.msk.f32.vlgmr.msrb.gmra.mxu2 %vm427_vm8, %v617_v47  ;;  %v561_v54 = vsel %vm350_vm5, %v1011_v51, %v1012_v50  ;;  %v560_v57 = vsel %vm350_vm5, %v1012_v50, %v1006_v35 }
 0x1fd   : > { %639 = vmatpush.msrb.mxu0 %v561_v54  ;;  %659 = vmatpush.msrb.mxu1 %v560_v57 }
 0x1ff   : > { %640 = vmatpush.msrb.mxu0 %v550_v58  ;;  %660 = vmatpush.msrb.mxu1 %v549_v40 }
 0x201   : > { %641 = vmatpush.msrb.mxu0 %v539_v59  ;;  %661 = vmatpush.msrb.mxu1 %v538_v60  ;;  %v622_v61 = vpop.permute.xlu0 %621 }
 0x203   : > { %642 = vmatpush.msrb.mxu0 %v1570_v34  ;;  %662 = vmatpush.msrb.mxu1 %v1572_v4 }
 0x204   : > { %826 = vmatmul.msk.f32.vlgmr.msrb.gmra.mxu0 %vm427_vm8, %v617_v47  ;;  %827 = vmatmul.msk.f32.vlgmr.msrb.gmra.mxu1 %vm427_vm8, %v617_v47 }
 0x27f   : > { %v684_v62 = vpop.f32.mrf.mxu2 }
 0x280   : > { %v685_v63 = vadd.f32 %v684_v62, %v622_v61 }
 0x281   : > { %v644_v3 = vpop.f32.mrf.mxu0  ;;  %v664_v0 = vpop.f32.mrf.mxu1 }
 0x282   : > { %v689_v7 = vadd.f32 %v685_v63, %v1417_v16  ;;  %v645_v34 = vadd.f32 %v644_v3, %v622_v61  ;;  %v665_v4 = vadd.f32 %v664_v0, %v622_v61 }
 0x284   : > { %v692_v2 = vmax.f32 %v689_v7, 0.0  ;;  %v687_v5 = vadd.f32 %v645_v34, %v1496_v55  ;;  %v688_v6 = vadd.f32 %v665_v4, %v1501_v56 }
 0x286   : > { %695 = vst [vmem:[%s309_s24 + $0x10] sm:$0xff] %v692_v2  ;;  %v690_v8 = vmax.f32 %v687_v5, 0.0  ;;  %v691_v10 = vmax.f32 %v688_v6, 0.0 }
 0x288   : > { %693 = vst [vmem:[%s309_s24] sm:$0xff] %v690_v8 }
 0x289   : > { %694 = vst [vmem:[%s309_s24 + $0x8] sm:$0xff] %v691_v10 }
 0x28a   : > { %1121 = shalt.err (!%p1118_p0)
}
 0x28b   : > { %841 = dma.vmem_to_hbm [thread:$0]  (%p1306_p5), %s713_s20, 384, %s715_s10, %s697_s11  }
 0x28c PF: > { %s726_s8 = sand.u32 1, %s1160_s21   ;;  %p852_p3 = pnand %p815_p9, %p1276_p6 }
 0x28d   : > { %s727_s29 = scalar_lea.sflag [#allocation4], %s726_s8 }
 0x28e   : > { %p853_p7 = pneg %p852_p3 }
 0x290   : > { %1155 = dma.done.wait (%p853_p7), %s727_s29, 384  }
 0x291   : > { %1157 = vsyncadd (%p853_p7), %s727_s29, 4294966912  ;;  %s23_s26 = sadd.s32 1, %s1180_s26   ;;  %s1720_s21 = smov %s1164_s22 }
 0x292   : > { %p20_p10 = scmp.ge.s32.totalorder %s23_s26, 4   ;;  %s1721_s22 = smov %s1168_s23 }
 0x293   : > { %s1722_s23 = smov %s1315_s28  ;;  %s1723_s24 = smov %s1176_s25 }
 0x294   : > { %s1724_s25 = smov %s1726_s15  ;;  %22 = sbr.rel (!%p20_p10) target bundleno = 9 (0x9), region = 94 }
 0x299   :  { %733 = vsyncpa [#allocation3], 1 }
 0x29a   :  { %735 = vsyncpa [#allocation3 + $0x1], 1 }
 0x29b   :  { %736 = vsyncpa [#allocation6], 1 }
 0x29c   :  { %737 = vsyncpa [#allocation4], 1 }
 0x29d   :  { %739 = vsyncpa [#allocation4 + $0x1], 1 }

</bundles_post_ra>
